<compile_context>
chip_gen: v6e
topology: v6e:2x2x1
jax: 0.10.0
libtpu: 0.0.40
codegen_flags: <defaults>
</compile_context>

<pallas_src>
import functools

import jax
import jax.numpy as jnp
from jax.experimental import pallas as pl
from jax.experimental.pallas import tpu as pltpu

LN_EPS = 1e-5  # torch.nn.LayerNorm default


def _round_up(v, m):
    return (v + m - 1) // m * m


def _pick_band_tile(num_bands, w2, target_tokens):
    """Pick rows-of-2x2-bands per grid step.

    Constraints: divides num_bands exactly (no masking), output tile rows (ti * w2) are a
    multiple of 8 (sublane rule) unless the tile covers the whole output, and prefer >= 2
    grid steps (v7x has 2 TensorCores sharing the "parallel" axis).
    """
    divisors = [d for d in range(1, num_bands + 1) if num_bands % d == 0]
    valid = [d for d in divisors if (d * w2) % 8 == 0 or d == num_bands]
    budget = max(w2, target_tokens)
    pools = (
        [d for d in valid if d * w2 <= budget and num_bands // d >= 2],
        [d for d in valid if d * w2 <= budget],
        valid,
    )
    for pool in pools:
        if pool:
            return max(pool)
    return num_bands


def _merge_linear_ln_kernel(x_ref, w_ref, b_ref, g_ref, bt_ref, o_ref, *, n_true, eps):
    # x_ref : (ti, 2, W2, 2C)  -- ti contiguous 2-row bands (dim1 = row parity)
    # w_ref : (2, 2C, Np)      -- restacked weight: [0]=even-row half, [1]=odd-row half
    # b_ref/g_ref/bt_ref : (1, Np)
    # o_ref : (ti*W2, Np)
    ti, _, w2, twoc = x_ref.shape
    rows = ti * w2

    x_even = x_ref[:, 0, :, :].reshape(rows, twoc)   # row parity 0 (even input rows)
    x_odd = x_ref[:, 1, :, :].reshape(rows, twoc)    # row parity 1 (odd input rows)

    # Native-dtype MXU matmuls with f32 accumulation.
    acc = jnp.dot(x_even, w_ref[0], preferred_element_type=jnp.float32)
    acc = acc + jnp.dot(x_odd, w_ref[1], preferred_element_type=jnp.float32)
    y = acc + b_ref[...].astype(jnp.float32)         # (rows, Np); padded lanes are exactly 0

    # LayerNorm over the true N channels (padded columns of y are exactly zero).
    inv_n = 1.0 / float(n_true)
    mean = jnp.sum(y, axis=-1, keepdims=True) * inv_n
    ex2 = jnp.sum(y * y, axis=-1, keepdims=True) * inv_n
    var = ex2 - mean * mean
    scale = g_ref[...].astype(jnp.float32) * jax.lax.rsqrt(var + eps)   # (rows, Np)
    shift = bt_ref[...].astype(jnp.float32) - mean * scale
    o_ref[...] = (y * scale + shift).astype(o_ref.dtype)


def init_patch_merging_params(key, in_channels, out_channels, dtype=jnp.float32):
    """Deterministic synthetic parameters (shapes match the PyTorch module)."""
    k_w, k_b = jax.random.split(key)
    k_in = 4 * in_channels
    bound = 1.0 / jnp.sqrt(k_in)
    # nn.Linear(in*4, out): torch weight is (out, in); store transposed as (in, out).
    w = jax.random.uniform(k_w, (k_in, out_channels), dtype, -bound, bound)
    b = jax.random.uniform(k_b, (out_channels,), dtype, -bound, bound)
    gamma = jnp.ones((out_channels,), dtype)   # nn.LayerNorm weight
    beta = jnp.zeros((out_channels,), dtype)   # nn.LayerNorm bias
    return {"w": w, "b": b, "gamma": gamma, "beta": beta}


def patch_merging_layer(x, params, image_resolution, target_tokens_per_tile=1024):
    """x: (B, H*W, C) -> (B, (H/2)*(W/2), out_channels)."""
    h, w_res = image_resolution
    B, L, C = x.shape
    assert L == h * w_res and h % 2 == 0 and w_res % 2 == 0
    H2, W2 = h // 2, w_res // 2
    num_bands = B * H2           # one "band" = one 2-row strip of the image
    M = num_bands * W2           # merged tokens

    W = params["w"]              # (4C, N), rows in concat order [(0,0),(1,0),(0,1),(1,1)]
    N = W.shape[1]
    Np = _round_up(N, 128)       # lane-dense output width

    # Restack weight rows so each half-band (even / odd input row) uses one (2C, N) slab.
    # Concat order in the PyTorch forward: [TL(0,0), TR(1,0), BL(0,1), BR(1,1)].
    w4 = W.reshape(4, C, N)
    w_even = jnp.concatenate([w4[0], w4[2]], axis=0)   # chunks for (row0,col0),(row0,col1)
    w_odd = jnp.concatenate([w4[1], w4[3]], axis=0)    # chunks for (row1,col0),(row1,col1)
    w_stack = jnp.stack([w_even, w_odd])               # (2, 2C, N)
    if Np != N:
        w_stack = jnp.pad(w_stack, ((0, 0), (0, 0), (0, Np - N)))

    def _pad_vec(v):
        v = v.reshape(1, N)
        return jnp.pad(v, ((0, 0), (0, Np - N))) if Np != N else v

    b2 = _pad_vec(params["b"])
    g2 = _pad_vec(params["gamma"])
    bt2 = _pad_vec(params["beta"])

    # Free reshape of the contiguous input: (B, H, W, C) == (B*H2, row_parity, W2, col_parity*C).
    xr = x.reshape(num_bands, 2, W2, 2 * C)

    # Tile sizing: ~target tokens per grid step, VMEM-capped for large C.
    itemsize = jnp.dtype(x.dtype).itemsize
    vmem_cap_tokens = max(128, (8 * 1024 * 1024) // max(1, 4 * C * itemsize))
    target = max(W2, min(target_tokens_per_tile, vmem_cap_tokens))
    ti = _pick_band_tile(num_bands, W2, target)
    tm = ti * W2
    grid = (num_bands // ti,)

    # Explicit VMEM budget with headroom (never below the 32 MiB scoped default).
    in_block = ti * 2 * _round_up(W2, 8) * _round_up(2 * C, 128) * itemsize
    w_bytes = 2 * (2 * C) * Np * jnp.dtype(w_stack.dtype).itemsize
    out_block = tm * Np * itemsize
    est = 2 * (in_block + w_bytes + out_block) + 6 * Np * 4
    vmem_limit = int(min(max(2 * est, 32 * 1024 * 1024), 64 * 1024 * 1024))
    # TODO(synk): for very large C (e.g. last Swin stage on v7x's 64 MiB VMEM), add a K-reduction
    #             grid axis + single-buffered weight instead of keeping the full (2,2C,Np) resident.

    kernel = functools.partial(_merge_linear_ln_kernel, n_true=N, eps=LN_EPS)

    out2d = pl.pallas_call(
        kernel,
        out_shape=jax.ShapeDtypeStruct((M, Np), x.dtype),
        grid_spec=pltpu.PrefetchScalarGridSpec(
            num_scalar_prefetch=0,
            grid=grid,
            in_specs=[
                # ti contiguous 2-row bands (both row parities, full width) per step.
                pl.BlockSpec((ti, 2, W2, 2 * C), lambda r: (r, 0, 0, 0)),
                pl.BlockSpec((2, 2 * C, Np), lambda r: (0, 0, 0)),   # resident restacked weight
                pl.BlockSpec((1, Np), lambda r: (0, 0)),             # bias
                pl.BlockSpec((1, Np), lambda r: (0, 0)),             # LN gamma
                pl.BlockSpec((1, Np), lambda r: (0, 0)),             # LN beta
            ],
            out_specs=pl.BlockSpec((tm, Np), lambda r: (r, 0)),      # lane-dense output slab
        ),
        compiler_params=pltpu.CompilerParams(
            dimension_semantics=("parallel",),
            vmem_limit_bytes=vmem_limit,
        ),
    )(xr, w_stack, b2, g2, bt2)

    out2d = out2d[:, :N] if Np != N else out2d
    # TODO(synk): nn.Dropout(p=0.1) is stochastic in train mode; eval-mode identity here.
    return out2d.reshape(B, H2 * W2, N)


def _reference(x, params, image_resolution):
    """Pure-JAX reference mirroring the PyTorch forward (eval mode)."""
    h, w_res = image_resolution
    B, L, C = x.shape
    xg = x.reshape(B, h, w_res, C)
    tl = xg[:, 0::2, 0::2, :]
    tr = xg[:, 1::2, 0::2, :]
    br = xg[:, 1::2, 1::2, :]
    bl = xg[:, 0::2, 1::2, :]
    feats = jnp.concatenate([tl, tr, bl, br], axis=-1)
    y = feats @ params["w"] + params["b"]
    mean = y.mean(-1, keepdims=True)
    var = ((y - mean) ** 2).mean(-1, keepdims=True)
    y = (y - mean) / jnp.sqrt(var + LN_EPS) * params["gamma"] + params["beta"]
    return y.reshape(B, (h // 2) * (w_res // 2), -1)


if __name__ == "__main__":
    key = jax.random.PRNGKey(0)
    k_x, k_p = jax.random.split(key)

    B, C_in, C_out = 2, 4, 32
    H = W = 16
    image_resolution = (H, W)

    x = jax.random.normal(k_x, (B, H * W, C_in), jnp.float32)
    params = init_patch_merging_params(k_p, C_in, C_out)

    out = patch_merging_layer(x, params, image_resolution)
    jax.block_until_ready(out)
    assert out.shape == (B, (H // 2) * (W // 2), C_out)

    ref = _reference(x, params, image_resolution)
    max_err = float(jnp.max(jnp.abs(out - ref)))
    assert max_err < 2e-3, f"mismatch vs reference: max abs err {max_err}"

    print("KERNEL_OK")
</pallas_src>

<mosaic_0001>
module attributes {stable_mosaic.version = 11 : i64} {
  func.func @_merge_linear_ln_kernel(%arg0: i32, %arg1: memref<8x2x8x8xf32, #tpu.memory_space<vmem>>, %arg2: memref<2x8x128xf32, #tpu.memory_space<vmem>>, %arg3: memref<1x128xf32, #tpu.memory_space<vmem>>, %arg4: memref<1x128xf32, #tpu.memory_space<vmem>>, %arg5: memref<1x128xf32, #tpu.memory_space<vmem>>, %arg6: memref<64x128xf32, #tpu.memory_space<vmem>>) attributes {dimension_semantics = [#tpu.dimension_semantics<parallel>], iteration_bounds = array<i64: 2>, scalar_prefetch = 0 : i64, scratch_operands = 0 : i64, tpu.core_type = #tpu.core_type<tc>, window_params = [{transform_indices = @transform_0, window_bounds = array<i64: 8, 2, 8, 8>}, {pipeline_mode = #tpu.pipeline_mode<synchronous>, transform_indices = @transform_1, window_bounds = array<i64: 2, 8, 128>}, {pipeline_mode = #tpu.pipeline_mode<synchronous>, transform_indices = @transform_2, window_bounds = array<i64: 1, 128>}, {pipeline_mode = #tpu.pipeline_mode<synchronous>, transform_indices = @transform_3, window_bounds = array<i64: 1, 128>}, {pipeline_mode = #tpu.pipeline_mode<synchronous>, transform_indices = @transform_4, window_bounds = array<i64: 1, 128>}, {transform_indices = @transform_5, window_bounds = array<i64: 64, 128>}]} {
    %c0 = arith.constant 0 : index
    %c0_0 = arith.constant 0 : index
    %c0_1 = arith.constant 0 : index
    %c0_2 = arith.constant 0 : index
    %0 = vector.load %arg1[%c0, %c0_0, %c0_1, %c0_2] : memref<8x2x8x8xf32, #tpu.memory_space<vmem>>, vector<8x1x8x8xf32>
    %1 = vector.shape_cast %0 : vector<8x1x8x8xf32> to vector<8x8x8xf32>
    %2 = vector.shape_cast %1 : vector<8x8x8xf32> to vector<64x8xf32>
    %c0_3 = arith.constant 0 : index
    %c1 = arith.constant 1 : index
    %c0_4 = arith.constant 0 : index
    %c0_5 = arith.constant 0 : index
    %3 = vector.load %arg1[%c0_3, %c1, %c0_4, %c0_5] : memref<8x2x8x8xf32, #tpu.memory_space<vmem>>, vector<8x1x8x8xf32>
    %4 = vector.shape_cast %3 : vector<8x1x8x8xf32> to vector<8x8x8xf32>
    %5 = vector.shape_cast %4 : vector<8x8x8xf32> to vector<64x8xf32>
    %c0_6 = arith.constant 0 : index
    %c0_7 = arith.constant 0 : index
    %c0_8 = arith.constant 0 : index
    %6 = vector.load %arg2[%c0_6, %c0_7, %c0_8] : memref<2x8x128xf32, #tpu.memory_space<vmem>>, vector<1x8x128xf32>
    %7 = vector.shape_cast %6 : vector<1x8x128xf32> to vector<8x128xf32>
    %cst = arith.constant dense<0.000000e+00> : vector<64x128xf32>
    %8 = tpu.matmul %2, %7, %cst {dimension_numbers = #tpu.dot_dimension_numbers<[1], [0], [0], [1], [0, 0, 1, 1], [], []>} : vector<64x8xf32>, vector<8x128xf32>, vector<64x128xf32> -> vector<64x128xf32>
    %c1_9 = arith.constant 1 : index
    %c0_10 = arith.constant 0 : index
    %c0_11 = arith.constant 0 : index
    %9 = vector.load %arg2[%c1_9, %c0_10, %c0_11] : memref<2x8x128xf32, #tpu.memory_space<vmem>>, vector<1x8x128xf32>
    %10 = vector.shape_cast %9 : vector<1x8x128xf32> to vector<8x128xf32>
    %cst_12 = arith.constant dense<0.000000e+00> : vector<64x128xf32>
    %11 = tpu.matmul %5, %10, %cst_12 {dimension_numbers = #tpu.dot_dimension_numbers<[1], [0], [0], [1], [0, 0, 1, 1], [], []>} : vector<64x8xf32>, vector<8x128xf32>, vector<64x128xf32> -> vector<64x128xf32>
    %12 = arith.addf %8, %11 : vector<64x128xf32>
    %c0_13 = arith.constant 0 : index
    %c0_14 = arith.constant 0 : index
    %13 = vector.load %arg3[%c0_13, %c0_14] : memref<1x128xf32, #tpu.memory_space<vmem>>, vector<1x128xf32>
    %14 = vector.broadcast %13 : vector<1x128xf32> to vector<64x128xf32>
    %15 = arith.addf %12, %14 : vector<64x128xf32>
    %cst_15 = arith.constant dense<0.000000e+00> : vector<64xf32>
    %16 = vector.multi_reduction <add>, %15, %cst_15 [1] : vector<64x128xf32> to vector<64xf32>
    %17 = vector.shape_cast %16 : vector<64xf32> to vector<64x1xf32>
    %cst_16 = arith.constant 3.125000e-02 : f32
    %18 = vector.broadcast %cst_16 : f32 to vector<64x1xf32>
    %19 = arith.mulf %17, %18 : vector<64x1xf32>
    %20 = arith.mulf %15, %15 : vector<64x128xf32>
    %cst_17 = arith.constant dense<0.000000e+00> : vector<64xf32>
    %21 = vector.multi_reduction <add>, %20, %cst_17 [1] : vector<64x128xf32> to vector<64xf32>
    %22 = vector.shape_cast %21 : vector<64xf32> to vector<64x1xf32>
    %cst_18 = arith.constant 3.125000e-02 : f32
    %23 = vector.broadcast %cst_18 : f32 to vector<64x1xf32>
    %24 = arith.mulf %22, %23 : vector<64x1xf32>
    %25 = arith.mulf %19, %19 : vector<64x1xf32>
    %26 = arith.subf %24, %25 : vector<64x1xf32>
    %c0_19 = arith.constant 0 : index
    %c0_20 = arith.constant 0 : index
    %27 = vector.load %arg4[%c0_19, %c0_20] : memref<1x128xf32, #tpu.memory_space<vmem>>, vector<1x128xf32>
    %cst_21 = arith.constant 9.99999974E-6 : f32
    %28 = vector.broadcast %cst_21 : f32 to vector<64x1xf32>
    %29 = arith.addf %26, %28 : vector<64x1xf32>
    %30 = math.rsqrt %29 : vector<64x1xf32>
    %31 = vector.broadcast %27 : vector<1x128xf32> to vector<64x128xf32>
    %32 = vector.broadcast %30 : vector<64x1xf32> to vector<64x128xf32>
    %33 = arith.mulf %31, %32 : vector<64x128xf32>
    %c0_22 = arith.constant 0 : index
    %c0_23 = arith.constant 0 : index
    %34 = vector.load %arg5[%c0_22, %c0_23] : memref<1x128xf32, #tpu.memory_space<vmem>>, vector<1x128xf32>
    %35 = vector.broadcast %19 : vector<64x1xf32> to vector<64x128xf32>
    %36 = arith.mulf %35, %33 : vector<64x128xf32>
    %37 = vector.broadcast %34 : vector<1x128xf32> to vector<64x128xf32>
    %38 = arith.subf %37, %36 : vector<64x128xf32>
    %39 = arith.mulf %15, %33 : vector<64x128xf32>
    %40 = arith.addf %39, %38 : vector<64x128xf32>
    %c0_24 = arith.constant 0 : index
    %c0_25 = arith.constant 0 : index
    %41 = vector.load %arg6[%c0_24, %c0_25] : memref<64x128xf32, #tpu.memory_space<vmem>>, vector<64x128xf32>
    tpu.vector_store %arg6[%c0_24, %c0_25], %40 {strides = array<i32>} : memref<64x128xf32, #tpu.memory_space<vmem>>, vector<64x128xf32>,
    return
  }
  func.func @transform_0(%arg0: i32) -> (i32, i32, i32, i32) {
    %c0_i32 = arith.constant 0 : i32
    %c0_i32_0 = arith.constant 0 : i32
    %c0_i32_1 = arith.constant 0 : i32
    %c0_i32_2 = arith.constant 0 : i32
    return %arg0, %c0_i32, %c0_i32_0, %c0_i32_1 : i32, i32, i32, i32
  }
  func.func @transform_1(%arg0: i32) -> (i32, i32, i32) {
    %c0_i32 = arith.constant 0 : i32
    %c0_i32_0 = arith.constant 0 : i32
    %c0_i32_1 = arith.constant 0 : i32
    %c0_i32_2 = arith.constant 0 : i32
    return %c0_i32, %c0_i32_0, %c0_i32_1 : i32, i32, i32
  }
  func.func @transform_2(%arg0: i32) -> (i32, i32) {
    %c0_i32 = arith.constant 0 : i32
    %c0_i32_0 = arith.constant 0 : i32
    %c0_i32_1 = arith.constant 0 : i32
    return %c0_i32, %c0_i32_0 : i32, i32
  }
  func.func @transform_3(%arg0: i32) -> (i32, i32) {
    %c0_i32 = arith.constant 0 : i32
    %c0_i32_0 = arith.constant 0 : i32
    %c0_i32_1 = arith.constant 0 : i32
    return %c0_i32, %c0_i32_0 : i32, i32
  }
  func.func @transform_4(%arg0: i32) -> (i32, i32) {
    %c0_i32 = arith.constant 0 : i32
    %c0_i32_0 = arith.constant 0 : i32
    %c0_i32_1 = arith.constant 0 : i32
    return %c0_i32, %c0_i32_0 : i32, i32
  }
  func.func @transform_5(%arg0: i32) -> (i32, i32) {
    %c0_i32 = arith.constant 0 : i32
    %c0_i32_0 = arith.constant 0 : i32
    return %arg0, %c0_i32 : i32, i32
  }
}

</mosaic_0001>

<bundles_post_ra>
// kernel: tpu_custom_call.1
= control target key start
LH: loop header
LB: loop body
LE: loop exit
PB: predicated region body
PF: predicated region fallthrough
CT: control target
= control target key end

     0   :  { %10 = vsyncpa [#allocation3], 0  ;;  %s1230_s0 = inlined_call_operand.vmem [shape: f32[16,2,8,8], index: 0, kind: input, shape index: {}]   ;;  %s1231_s1 = inlined_call_operand.vmem [shape: f32[2,8,128], index: 1, kind: input, shape index: {}]   ;;  %s1232_s2 = inlined_call_operand.vmem [shape: f32[1,128], index: 2, kind: input, shape index: {}]   ;;  %s1233_s3 = inlined_call_operand.vmem [shape: f32[1,128], index: 3, kind: input, shape index: {}]   ;;  %s1234_s4 = inlined_call_operand.vmem [shape: f32[1,128], index: 4, kind: input, shape index: {}]   ;;  %s1235_s5 = inlined_call_operand.hbm [shape: f32[128,128], index: 5, kind: output, shape index: {}]  }
   0x1   :  { %12 = vsyncpa [#allocation3 + $0x1], 0  ;;  %s990_s18 = smov 0   ;;  %s992_s19 = smov 0  }
   0x2   :  { %s994_s20 = smov 0   ;;  %s996_s21 = smov 0  }
   0x3 LB: > { %s1011_s22 = sadd.s32 4294967295, %s955_s21   ;;  %s749_s23 = sadd.s32 4294967294, %s955_s21   ;;  %s955_s21 = sphi %s996_s21, %s1241_s21   ;;  %s951_s20 = sphi %s994_s20, %s1240_s20   ;;  %s947_s19 = sphi %s992_s19, %s1239_s19   ;;  %s943_s18 = sphi %s990_s18, %s1238_s18  }
   0x4   : > { %s1015_s24 = sadd.s32 1, %s955_s21   ;;  %s135_s25 = sadd.s32 1, %s951_s20 }
   0x5   : > { %s132_s26 = ssub.s32 %s955_s21, %s1015_s24  ;;  %p145_p0 = scmp.ne.s32.totalorder %s951_s20, %s947_s19 }
   0x6   : > { %p133_p1 = scmp.eq.s32.totalorder %s132_s26, 0  ;;  %p146_p2 = scmp.eq.s32.totalorder %s1011_s22, 1 }
   0x7   : > { %p151_p3 = scmp.ne.s32.totalorder %s947_s19, %s943_s18  ;;  %p152_p4 = scmp.eq.s32.totalorder %s749_s23, 1 }
   0x8   : > { %s1026_s27 = scalar_select %p133_p1, %s951_s20, %s135_s25  }
   0x9   : > { %p1028_p5 = por %p146_p2, %p145_p0  ;;  %p1032_p6 = por %p152_p4, %p151_p3 }
   0xa   : > { %p752_p7 = scmp.ge.s32.totalorder %s955_s21, 1  ;;  %p192_p8 = scmp.lt.s32.totalorder %s955_s21, 3 }
   0xc   : > { %p193_p9 = pnand %p752_p7, %p192_p8 }
   0xd   : > { %s754_s9 = sshll.u32 (!%p193_p9), %s1011_s22, 3  ;;  %s218_s23 = sand.u32 (!%p193_p9), 1, %s947_s19  }
   0xe   : > { %196 = sbr.rel (%p193_p9) target bundleno = 432 (0x1b0), region = 40  ;;  %p222_p10 = scmp.lt.s32.totalorder (!%p193_p9), %s754_s9, 15 }
   0xf   : > { %s753_s30 = sshll.u32 (!%p193_p9), %s218_s23, 6  ;;  %s791_s7 = sshll.u32 (!%p193_p9), %s1011_s22, 10 }
  0x10   : > { %s1144_s6 = scalar_lea.vmem (!%p193_p9), [#allocation2], %s753_s30  ;;  %s1182_s11 = scalar_lea.hbm (!%p193_p9), %s1235_s5, %s791_s7 }
  0x11   : > { %s687_s8 = sshll.u32 (!%p193_p9), %s1144_s6, 4  ;;  %s1190_s22 = scalar_lea.sflag (!%p193_p9), [#allocation3], %s218_s23  ;;  %s1184_s8 = int_to_ptr.vmem [resolvable:$true] %s687_s8 }
  0x12   : > { %s895_s12 = scalar_lea.vmem (!%p193_p9), %s1184_s8, 1024 }
  0x13   : > { %v765_v0 = vld [vmem:[%s1231_s1 + $0x8] sm:$0xff]  ;;  %v246_v1 = vld [vmem:[%s1231_s1] sm:$0xff]  ;;  %s1243_s9 = smov (!%p222_p10, %s754_s9), 15  ;;  %vm249_vm0 = vcmask 64512   ;;  %p896_p11 = scmp.ne.s32.totalorder %s1184_s8, %s895_s12 }
  0x14   : > { %810 = vmatprep.subr.mxu0 %v765_v0  ;;  %824 = vmatprep.subr.mxu1 %v246_v1  ;;  %s790_s10 = sshll.u32 %s1243_s9, 4  ;;  %v782_v20 = vld [vmem:[%s1232_s2] ss:$0 sm:$0xff] }
  0x15   : > { %811 = vmatpush3.msra.mxu0 %v765_v0  ;;  %825 = vmatpush3.msra.mxu1 %v246_v1  ;;  %s226_s13 = scalar_lea.vmem %s1230_s0, %s790_s10  ;;  %p897_p12 = pnand %p896_p11, %p1028_p5 }
  0x16   : > { %v757_v2 = vld [vmem:[%s226_s13 + $0x8] sm:$0xff]  ;;  %v229_v3 = vld [vmem:[%s226_s13] sm:$0xff]  ;;  %v758_v4 = vld [vmem:[%s226_s13 + $0x18] sm:$0xff] }
  0x17   : > { %812 = vmatprep.mubr.msk.f32.mxu0 %vm249_vm0, %v757_v2  ;;  %826 = vmatprep.mubr.msk.f32.mxu1 %vm249_vm0, %v229_v3  ;;  %v230_v5 = vld [vmem:[%s226_s13 + $0x10] sm:$0xff]  ;;  %v759_v6 = vld [vmem:[%s226_s13 + $0x28] sm:$0xff]  ;;  %v231_v7 = vld [vmem:[%s226_s13 + $0x20] sm:$0xff]  ;;  %p898_p13 = pneg %p897_p12 }
  0x18   : > { %813 = vmatmul.mubr.msk.f32.vlgmr.msra.gmra.mxu0 %vm249_vm0, %v758_v4  ;;  %827 = vmatmul.mubr.msk.f32.vlgmr.msra.gmra.mxu1 %vm249_vm0, %v230_v5  ;;  %v760_v8 = vld [vmem:[%s226_s13 + $0x38] sm:$0xff]  ;;  %v232_v9 = vld [vmem:[%s226_s13 + $0x30] sm:$0xff]  ;;  %v761_v10 = vld [vmem:[%s226_s13 + $0x48] sm:$0xff] }
  0x19   : > { %815 = vmatprep.mubr.msk.f32.mxu0 %vm249_vm0, %v759_v6  ;;  %829 = vmatprep.mubr.msk.f32.mxu1 %vm249_vm0, %v231_v7  ;;  %v233_v11 = vld [vmem:[%s226_s13 + $0x40] sm:$0xff]  ;;  %v762_v12 = vld [vmem:[%s226_s13 + $0x58] sm:$0xff]  ;;  %v234_v13 = vld [vmem:[%s226_s13 + $0x50] sm:$0xff] }
  0x1a   : > { %v763_v14 = vld [vmem:[%s226_s13 + $0x68] sm:$0xff]  ;;  %v235_v15 = vld [vmem:[%s226_s13 + $0x60] sm:$0xff]  ;;  %v764_v16 = vld [vmem:[%s226_s13 + $0x78] sm:$0xff] }
  0x1b   : > { %v236_v17 = vld [vmem:[%s226_s13 + $0x70] sm:$0xff]  ;;  %s957_s13 = smov [#allocation2]  }
  0x1c   : > { %816 = vmatmul.mubr.msk.f32.gmra.mxu0 %vm249_vm0, %v760_v8  ;;  %830 = vmatmul.mubr.msk.f32.gmra.mxu1 %vm249_vm0, %v232_v9  ;;  %s899_s14 = sshll.u32 %s957_s13, 4  ;;  %s900_s14 = int_to_ptr.vmem [resolvable:$false] %s899_s14 }
  0x1d   : > { %818 = vmatprep.mubr.msk.f32.mxu0 %vm249_vm0, %v761_v10  ;;  %832 = vmatprep.mubr.msk.f32.mxu1 %vm249_vm0, %v233_v11  ;;  %s901_s15 = scalar_lea.vmem %s900_s14, 2048  ;;  %p902_p0 = scmp.lt.s32.totalorder %s1184_s8, %s900_s14 }
  0x1e   : > { %p903_p1 = scmp.lt.s32.totalorder %s901_s15, %s895_s12 }
  0x20   : > { %819 = vmatmul.mubr.msk.f32.gmra.mxu0 %vm249_vm0, %v762_v12  ;;  %833 = vmatmul.mubr.msk.f32.gmra.mxu1 %vm249_vm0, %v234_v13  ;;  %p904_p2 = por %p903_p1, %p902_p0 }
  0x21   : > { %821 = vmatprep.mubr.msk.f32.mxu0 %vm249_vm0, %v763_v14  ;;  %835 = vmatprep.mubr.msk.f32.mxu1 %vm249_vm0, %v235_v15 }
  0x22   : > { %p905_p3 = pnand %p904_p2, %p898_p13 }
  0x24   : > { %822 = vmatmul.mubr.msk.f32.gmra.mxu0 %vm249_vm0, %v764_v16  ;;  %836 = vmatmul.mubr.msk.f32.gmra.mxu1 %vm249_vm0, %v236_v17 }
  0xd8   : > { %v814_v18 = vpop.f32.mrf.mxu0  ;;  %v828_v19 = vpop.f32.mrf.mxu1 }
  0xd9   : > { %v475_v21 = vadd.f32 %v828_v19, %v814_v18 }
  0xda   : > { %v340_v22 = vpop.f32.mrf.mxu0  ;;  %v469_v23 = vpop.f32.mrf.mxu1 }
  0xdb   : > { %v1067_v24 = vadd.f32 %v782_v20, %v475_v21  ;;  %v470_v25 = vadd.f32 %v469_v23, %v340_v22 }
  0xdc   : > { %v817_v26 = vpop.f32.mrf.mxu0  ;;  %v831_v27 = vpop.f32.mrf.mxu1 }
  0xdd   : > { %v485_v28 = vadd.f32 %v831_v27, %v817_v26  ;;  %525 = vadd.xlane.f32.xlu0 %v1067_v24  ;;  %v548_v29 = vmul.f32 %v1067_v24, %v1067_v24  ;;  %v1072_v32 = vadd.f32 %v782_v20, %v470_v25 }
  0xde   : > { %v350_v30 = vpop.f32.mrf.mxu0  ;;  %v479_v31 = vpop.f32.mrf.mxu1 }
  0xdf   : > { %v1074_v33 = vadd.f32 %v782_v20, %v485_v28  ;;  %v480_v34 = vadd.f32 %v479_v31, %v350_v30  ;;  %557 = vadd.xlane.f32.xlu1 %v548_v29  ;;  %v547_v40 = vmul.f32 %v1072_v32, %v1072_v32  ;;  %v1126_v28 = vld [vmem:[%s1233_s3] ss:$0 sm:$0xff] }
  0xe0   : > { %v820_v35 = vpop.f32.mrf.mxu0  ;;  %v834_v36 = vpop.f32.mrf.mxu1 }
  0xe1   : > { %523 = vadd.xlane.f32.xlu0 %v1072_v32  ;;  %v1077_v39 = vadd.f32 %v782_v20, %v480_v34  ;;  %v495_v45 = vadd.f32 %v834_v36, %v820_v35  ;;  %v550_v47 = vmul.f32 %v1074_v33, %v1074_v33 }
  0xe2   : > { %v360_v37 = vpop.f32.mrf.mxu0  ;;  %v489_v38 = vpop.f32.mrf.mxu1 }
  0xe3   : > { %529 = vadd.xlane.f32.xlu1 %v1074_v33  ;;  %v490_v41 = vadd.f32 %v489_v38, %v360_v37  ;;  %v549_v44 = vmul.f32 %v1077_v39, %v1077_v39  ;;  %v1089_v50 = vadd.f32 %v782_v20, %v495_v45 }
  0xe4   : > { %v823_v42 = vpop.f32.mrf.mxu0  ;;  %v837_v43 = vpop.f32.mrf.mxu1 }
  0xe5   : > { %555 = vadd.xlane.f32.xlu0 %v547_v40  ;;  %v1085_v46 = vadd.f32 %v782_v20, %v490_v41  ;;  %v505_v53 = vadd.f32 %v837_v43, %v823_v42  ;;  %v552_v55 = vmul.f32 %v1089_v50, %v1089_v50  ;;  %v1137_v41 = vld [vmem:[%s1234_s4] ss:$0 sm:$0xff] }
  0xe6   : > { %v370_v48 = vpop.f32.mrf.mxu0  ;;  %v499_v49 = vpop.f32.mrf.mxu1 }
  0xe7   : > { %527 = vadd.xlane.f32.xlu1 %v1077_v39  ;;  %v500_v51 = vadd.f32 %v499_v49, %v370_v48  ;;  %v551_v52 = vmul.f32 %v1085_v46, %v1085_v46  ;;  %v1099_v56 = vadd.f32 %v782_v20, %v505_v53 }
  0xe9   : > { %559 = vadd.xlane.f32.xlu0 %v549_v44  ;;  %v1095_v54 = vadd.f32 %v782_v20, %v500_v51  ;;  %v554_v58 = vmul.f32 %v1099_v56, %v1099_v56 }
  0xeb   : > { %561 = vadd.xlane.f32.xlu1 %v550_v47  ;;  %v553_v57 = vmul.f32 %v1095_v54, %v1095_v54 }
  0xed   : > { %531 = vadd.xlane.f32.xlu0 %v1085_v46 }
  0xef   : > { %533 = vadd.xlane.f32.xlu1 %v1089_v50 }
  0xf1   : > { %563 = vadd.xlane.f32.xlu0 %v551_v52 }
  0xf3   : > { %565 = vadd.xlane.f32.xlu1 %v552_v55 }
  0xf5   : > { %535 = vadd.xlane.f32.xlu0 %v1095_v54 }
  0xf7   : > { %537 = vadd.xlane.f32.xlu1 %v1099_v56 }
  0xf9   : > { %567 = vadd.xlane.f32.xlu0 %v553_v57 }
  0xfb   : > { %569 = vadd.xlane.f32.xlu1 %v554_v58 }
 0x166   : > { %v526_v59 = vpop.xlane.xlu0 %525 }
 0x167   : > { %v540_v60 = vmul.f32 0.03125, %v526_v59 }
 0x168   : > { %v558_v61 = vpop.xlane.xlu1 %557 }
 0x169   : > { %v580_v62 = vmul.f32 %v540_v60, %v540_v60  ;;  %v572_v63 = vmul.f32 0.03125, %v558_v61 }
 0x16a   : > { %v524_v0 = vpop.xlane.xlu0 %523 }
 0x16b   : > { %v588_v1 = vsub.f32 %v572_v63, %v580_v62  ;;  %v1107_v2 = vmul.f32 0.03125, %v524_v0 }
 0x16c   : > { %v530_v3 = vpop.xlane.xlu1 %529 }
 0x16d   : > { %v597_v4 = vadd.f32 1e-05, %v588_v1  ;;  %v579_v6 = vmul.f32 %v1107_v2, %v1107_v2  ;;  %v1111_v9 = vmul.f32 0.03125, %v530_v3 }
 0x16e   : > { %v556_v5 = vpop.xlane.xlu0 %555 }
 0x16f   : > { %879 = vrsqrt.f32 %v597_v4  ;;  %v571_v7 = vmul.f32 0.03125, %v556_v5  ;;  %v582_v17 = vmul.f32 %v1111_v9, %v1111_v9 }
 0x170   : > { %v528_v8 = vpop.xlane.xlu1 %527 }
 0x171   : > { %v587_v10 = vsub.f32 %v571_v7, %v579_v6  ;;  %v1113_v11 = vmul.f32 0.03125, %v528_v8 }
 0x172   : > { %v560_v12 = vpop.xlane.xlu0 %559 }
 0x173   : > { %v596_v13 = vadd.f32 1e-05, %v587_v10  ;;  %v581_v14 = vmul.f32 %v1113_v11, %v1113_v11  ;;  %v573_v15 = vmul.f32 0.03125, %v560_v12 }
 0x174   : > { %v562_v16 = vpop.xlane.xlu1 %561 }
 0x175   : > { %881 = vrsqrt.f32 %v596_v13  ;;  %v589_v18 = vsub.f32 %v573_v15, %v581_v14  ;;  %v574_v19 = vmul.f32 0.03125, %v562_v16 }
 0x176   : > { %v532_v20 = vpop.xlane.xlu0 %531 }
 0x177   : > { %v598_v21 = vadd.f32 1e-05, %v589_v18  ;;  %v590_v22 = vsub.f32 %v574_v19, %v582_v17  ;;  %v1119_v23 = vmul.f32 0.03125, %v532_v20 }
 0x178   : > { %v534_v25 = vpop.xlane.xlu1 %533 }
 0x179   : > { %883 = vrsqrt.f32 %v598_v21  ;;  %v599_v26 = vadd.f32 1e-05, %v590_v22  ;;  %v1121_v27 = vmul.f32 0.03125, %v534_v25  ;;  %v583_v30 = vmul.f32 %v1119_v23, %v1119_v23 }
 0x17a   : > { %v564_v29 = vpop.xlane.xlu0 %563 }
 0x17b   : > { %885 = vrsqrt.f32 %v599_v26  ;;  %v575_v31 = vmul.f32 0.03125, %v564_v29  ;;  %v584_v37 = vmul.f32 %v1121_v27, %v1121_v27 }
 0x17c   : > { %v880_v34 = vpop.eup %879  ;;  %v566_v35 = vpop.xlane.xlu1 %565 }
 0x17d   : > { %v619_v36 = vmul.f32 %v880_v34, %v1126_v28  ;;  %v591_v38 = vsub.f32 %v575_v31, %v583_v30  ;;  %v576_v40 = vmul.f32 0.03125, %v566_v35 }
 0x17e   : > { %v536_v42 = vpop.xlane.xlu0 %535 }
 0x17f   : > { %v628_v43 = vmul.f32 %v619_v36, %v540_v60  ;;  %v600_v44 = vadd.f32 1e-05, %v591_v38  ;;  %v592_v45 = vsub.f32 %v576_v40, %v584_v37  ;;  %v650_v47 = vmul.f32 %v619_v36, %v1067_v24 }
 0x180   : > { %v545_v48 = vmul.f32 0.03125, %v536_v42  ;;  %v538_v49 = vpop.xlane.xlu1 %537 }
 0x181   : > { %v642_v51 = vsub.f32 %v1137_v41, %v628_v43  ;;  %887 = vrsqrt.f32 %v600_v44  ;;  %v601_v52 = vadd.f32 1e-05, %v592_v45  ;;  %v546_v53 = vmul.f32 0.03125, %v538_v49 }
 0x182   : > { %v882_v55 = vpop.eup %881  ;;  %v568_v57 = vpop.xlane.xlu0 %567  ;;  %v585_v61 = vmul.f32 %v545_v48, %v545_v48 }
 0x183   : > { %v658_v58 = vadd.f32 %v650_v47, %v642_v51  ;;  %v618_v59 = vmul.f32 %v882_v55, %v1126_v28  ;;  %889 = vrsqrt.f32 %v601_v52  ;;  %v577_v62 = vmul.f32 0.03125, %v568_v57 }
 0x184   : > { %v570_v60 = vpop.xlane.xlu1 %569  ;;  %v586_v63 = vmul.f32 %v546_v53, %v546_v53 }
 0x185   : > { %666 = vst [vmem:[%s1144_s6 + $0x8] sm:$0xff] %v658_v58  ;;  %v627_v24 = vmul.f32 %v618_v59, %v1107_v2  ;;  %v578_v0 = vmul.f32 0.03125, %v570_v60  ;;  %v593_v3 = vsub.f32 %v577_v62, %v585_v61  ;;  %v649_v5 = vmul.f32 %v618_v59, %v1072_v32 }
 0x186   : > { %v884_v1 = vpop.eup %883 }
 0x187   : > { %v641_v4 = vsub.f32 %v1137_v41, %v627_v24  ;;  %v620_v6 = vmul.f32 %v884_v1, %v1126_v28  ;;  %v594_v7 = vsub.f32 %v578_v0, %v586_v63  ;;  %v602_v10 = vadd.f32 1e-05, %v593_v3 }
 0x188   : > { %v886_v8 = vpop.eup %885 }
 0x189   : > { %v657_v12 = vadd.f32 %v649_v5, %v641_v4  ;;  %v629_v13 = vmul.f32 %v620_v6, %v1113_v11  ;;  %v621_v2 = vmul.f32 %v886_v8, %v1126_v28  ;;  %891 = vrsqrt.f32 %v602_v10 }
 0x18a   : > { %v603_v14 = vadd.f32 1e-05, %v594_v7  ;;  %v651_v16 = vmul.f32 %v620_v6, %v1077_v39 }
 0x18b   : > { %665 = vst [vmem:[%s1144_s6] sm:$0xff] %v657_v12  ;;  %v643_v15 = vsub.f32 %v1137_v41, %v629_v13  ;;  %v630_v32 = vmul.f32 %v621_v2, %v1111_v9  ;;  %v652_v19 = vmul.f32 %v621_v2, %v1074_v33 }
 0x18c   : > { %893 = vrsqrt.f32 %v603_v14 }
 0x18d   : > { %v659_v17 = vadd.f32 %v651_v16, %v643_v15  ;;  %v644_v18 = vsub.f32 %v1137_v41, %v630_v32 }
 0x18e   : > { %v888_v11 = vpop.eup %887 }
 0x18f   : > { %667 = vst [vmem:[%s1144_s6 + $0x10] sm:$0xff] %v659_v17  ;;  %v660_v20 = vadd.f32 %v652_v19, %v644_v18  ;;  %v622_v21 = vmul.f32 %v888_v11, %v1126_v28 }
 0x190   : > { %v890_v22 = vpop.eup %889 }
 0x191   : > { %668 = vst [vmem:[%s1144_s6 + $0x18] sm:$0xff] %v660_v20  ;;  %v631_v25 = vmul.f32 %v622_v21, %v1119_v23  ;;  %v623_v39 = vmul.f32 %v890_v22, %v1126_v28  ;;  %v653_v26 = vmul.f32 %v622_v21, %v1085_v46 }
 0x193   : > { %v645_v9 = vsub.f32 %v1137_v41, %v631_v25  ;;  %v632_v33 = vmul.f32 %v623_v39, %v1121_v27  ;;  %v654_v31 = vmul.f32 %v623_v39, %v1089_v50 }
 0x195   : > { %v661_v29 = vadd.f32 %v653_v26, %v645_v9  ;;  %v646_v30 = vsub.f32 %v1137_v41, %v632_v33 }
 0x196   : > { %v892_v34 = vpop.eup %891 }
 0x197   : > { %669 = vst [vmem:[%s1144_s6 + $0x20] sm:$0xff] %v661_v29  ;;  %v662_v35 = vadd.f32 %v654_v31, %v646_v30  ;;  %v624_v23 = vmul.f32 %v892_v34, %v1126_v28 }
 0x199   : > { %v894_v36 = vpop.eup %893  ;;  %670 = vst [vmem:[%s1144_s6 + $0x28] sm:$0xff] %v662_v35  ;;  %v633_v46 = vmul.f32 %v624_v23, %v545_v48  ;;  %v655_v38 = vmul.f32 %v624_v23, %v1095_v54 }
 0x19a   : > { %v625_v37 = vmul.f32 %v894_v36, %v1126_v28 }
 0x19b   : > { %v647_v27 = vsub.f32 %v1137_v41, %v633_v46 }
 0x19c   : > { %v634_v40 = vmul.f32 %v625_v37, %v546_v53  ;;  %v656_v43 = vmul.f32 %v625_v37, %v1099_v56 }
 0x19d   : > { %v663_v50 = vadd.f32 %v655_v38, %v647_v27 }
 0x19e   : > { %v648_v42 = vsub.f32 %v1137_v41, %v634_v40 }
 0x19f   : > { %671 = vst [vmem:[%s1144_s6 + $0x30] sm:$0xff] %v663_v50 }
 0x1a0   : > { %v664_v54 = vadd.f32 %v656_v43, %v648_v42 }
 0x1a2   : > { %672 = vst [vmem:[%s1144_s6 + $0x38] sm:$0xff] %v664_v54 }
 0x1a3   : > { %908 = shalt.err (!%p905_p3)
}
 0x1a4   : > { %s909_s16 = scalar_lea.hbm %s1182_s11, 1024  ;;  %s913_s25 = scalar_lea.hbm %s1235_s5, 2048 }
 0x1a5   : > { %p910_p4 = scmp.ne.s32.totalorder %s1182_s11, %s909_s16  ;;  %p914_p9 = scmp.lt.s32.totalorder %s1182_s11, %s1235_s5 }
 0x1a6   : > { %p915_p10 = scmp.lt.s32.totalorder %s913_s25, %s909_s16 }
 0x1a7   : > { %p911_p7 = pnand %p910_p4, %p1028_p5 }
 0x1a8   : > { %p916_p11 = por %p915_p10, %p914_p9 }
 0x1a9   : > { %p912_p8 = pneg %p911_p7 }
 0x1ab   : > { %p917_p12 = pnand %p916_p11, %p912_p8 }
 0x1ad   : > { %920 = shalt.err (!%p917_p12)
}
 0x1ae   : > { %s958_s6 = smov 128   ;;  %s959_s7 = smov 8  }
 0x1af   : > { %838 = dma.vmem_to_hbm [thread:$0]  (%p1028_p5), %s1184_s8, 1024, %s1182_s11, %s1190_s22, %s958_s6, %s958_s6, %s959_s7  }
 0x1b0 PF: > { %p844_p13 = scmp.ge.s32.totalorder %s955_s21, 2  ;;  %s702_s9 = sand.u32 1, %s943_s18  }
 0x1b1   : > { %s703_s10 = scalar_lea.sflag [#allocation3], %s702_s9 }
 0x1b2   : > { %p841_p0 = pnand %p844_p13, %p1032_p6 }
 0x1b4   : > { %p842_p1 = pneg %p841_p0 }
 0x1b6   : > { %938 = dma.done.wait (%p842_p1), %s703_s10, 1024  }
 0x1b7   : > { %940 = vsyncadd (%p842_p1), %s703_s10, 4294966272  ;;  %p15_p2 = scmp.ge.s32.totalorder %s1015_s24, 4   ;;  %s1238_s18 = smov %s947_s19 }
 0x1b8   : > { %s1239_s19 = smov %s951_s20  ;;  %s1240_s20 = smov %s1026_s27 }
 0x1b9   : > { %s1241_s21 = smov %s1015_s24  ;;  %17 = sbr.rel (!%p15_p2) target bundleno = 3 (0x3), region = 77 }
 0x1be   :  { %708 = vsyncpa [#allocation3], 1 }
 0x1bf   :  { %710 = vsyncpa [#allocation3 + $0x1], 1 }

</bundles_post_ra>
